<compile_context>
chip_gen: v6e
topology: v6e:2x2x1
jax: 0.10.0
libtpu: 0.0.40
codegen_flags: <defaults>
</compile_context>

<pallas_src>
import functools

import jax
import jax.numpy as jnp
from jax import lax
from jax.experimental import pallas as pl
from jax.experimental.pallas import tpu as pltpu


def _dsconv3d_kernel(x_ref, w_ref, b_ref, o_ref, acc_ref, *, K, stride, Ho, Wo):
    # x_ref  : (Hp, Wp, Cin)        one padded input D-plane (plane d*stride+kd)
    # w_ref  : (K*K, Cin, Cout)     combined (depthwise*pointwise) taps for this kd
    # b_ref  : (1, Cout)            folded bias (bd @ Wp + bp), float32
    # o_ref  : (Ho, Wo, Cout)       one output D-plane
    # acc_ref: (Ho*Wo, Cout) f32    accumulator, persists across the kd grid axis
    kd = pl.program_id(2)

    @pl.when(kd == 0)
    def _init():
        acc_ref[...] = jnp.zeros_like(acc_ref)

    cin = x_ref.shape[-1]
    acc = acc_ref[...]
    # K*K taps of this kd-plane: each tap is a (Ho*Wo, Cin) @ (Cin, Cout)
    # accumulating matmul on the MXU (contraction over channels).
    for kh in range(K):
        for kw in range(K):
            if stride == 1:
                window = x_ref[kh:kh + Ho, kw:kw + Wo, :]
            else:
                window = x_ref[pl.ds(kh, Ho, stride), pl.ds(kw, Wo, stride), :]
            lhs = window.reshape(Ho * Wo, cin)
            acc = acc + jnp.dot(lhs, w_ref[kh * K + kw],
                                preferred_element_type=jnp.float32)
    acc_ref[...] = acc

    @pl.when(kd == K - 1)
    def _finalize():
        out = acc_ref[...] + b_ref[0, :]
        o_ref[...] = out.reshape(Ho, Wo, o_ref.shape[-1]).astype(o_ref.dtype)


def depth_sep_conv3d(x, wd, bd, wp, bp, *, stride=1, padding=1):
    """Depthwise-separable Conv3d (matches nn.Conv3d(groups=Cin) -> nn.Conv3d(1x1x1)).

    x : (N, Cin, D, H, W)                       (PyTorch NCDHW)
    wd: (Cin, 1, K, K, K), bd: (Cin,)           depthwise conv params
    wp: (Cout, Cin, 1, 1, 1), bp: (Cout,)       pointwise conv params
    returns (N, Cout, Do, Ho, Wo)
    """
    N, Cin, D, H, W = x.shape
    K = wd.shape[-1]
    Cout = wp.shape[0]
    Do = (D + 2 * padding - K) // stride + 1
    Ho = (H + 2 * padding - K) // stride + 1
    Wo = (W + 2 * padding - K) // stride + 1

    # Glue (plain JAX): channels-last + spatial zero padding.
    x_ndhwc = jnp.transpose(x, (0, 2, 3, 4, 1))
    xp = jnp.pad(x_ndhwc, ((0, 0),
                           (padding, padding),
                           (padding, padding),
                           (padding, padding),
                           (0, 0)))
    Dp, Hp, Wp_ = D + 2 * padding, H + 2 * padding, W + 2 * padding

    # Fold depthwise taps into the pointwise weight (per-tap (Cin, Cout) MXU
    # weights) and fold the depthwise bias into the pointwise bias:
    #   (dw(x) + bd) @ Wp + bp == sum_tap window_tap @ (wd_tap[:,None] * Wp)
    #                              + (bd @ Wp + bp)
    wd_taps = wd.reshape(Cin, K * K * K).astype(jnp.float32)          # (Cin, K^3)
    wp2 = wp.reshape(Cout, Cin).T.astype(jnp.float32)                 # (Cin, Cout)
    w_comb = (wd_taps.T[:, :, None] * wp2[None, :, :]).astype(x.dtype)
    w_comb = w_comb.reshape(K, K * K, Cin, Cout)                      # kd-major
    b_fold = (bd.astype(jnp.float32) @ wp2
              + bp.astype(jnp.float32)).reshape(1, Cout)              # (1, Cout)

    kernel = functools.partial(_dsconv3d_kernel, K=K, stride=stride, Ho=Ho, Wo=Wo)

    out_ndhwc = pl.pallas_call(
        kernel,
        out_shape=jax.ShapeDtypeStruct((N, Do, Ho, Wo, Cout), x.dtype),
        grid_spec=pltpu.PrefetchScalarGridSpec(
            num_scalar_prefetch=0,
            grid=(N, Do, K),                       # kd (reduction) innermost
            in_specs=[
                # One padded input plane: plane index = do*stride + kd.
                pl.BlockSpec((pl.Squeezed(), pl.Squeezed(), Hp, Wp_, Cin),
                             lambda n, d, kd: (n, d * stride + kd, 0, 0, 0)),
                # Combined weights for this kd (tiny: K*K x Cin x Cout).
                pl.BlockSpec((pl.Squeezed(), K * K, Cin, Cout),
                             lambda n, d, kd: (kd, 0, 0, 0)),
                # Folded bias.
                pl.BlockSpec((1, Cout), lambda n, d, kd: (0, 0)),
            ],
            # Output block index is constant across kd -> stays resident in
            # VMEM and is written back only when (n, d) changes.
            out_specs=pl.BlockSpec((pl.Squeezed(), pl.Squeezed(), Ho, Wo, Cout),
                                   lambda n, d, kd: (n, d, 0, 0, 0)),
            scratch_shapes=[pltpu.VMEM((Ho * Wo, Cout), jnp.float32)],
        ),
        compiler_params=pltpu.CompilerParams(
            # N / Do are independent (megacore-shardable on v7x); kd is the
            # accumulation axis. Default VMEM limit is ample for per-plane
            # blocks; raise vmem_limit_bytes only if tiles are grown.
            dimension_semantics=("parallel", "parallel", "arbitrary")),
    )(xp, w_comb, b_fold)

    return jnp.transpose(out_ndhwc, (0, 4, 1, 2, 3))


if __name__ == "__main__":
    key = jax.random.PRNGKey(0)
    k1, k2, k3, k4, k5 = jax.random.split(key, 5)

    # Small shapes consistent with the module (Conv3d => NCDHW input).
    N, Cin, Cout, D, H, W, K = 2, 4, 8, 8, 8, 8, 3
    x = jax.random.normal(k1, (N, Cin, D, H, W), jnp.float32)
    wd = jax.random.normal(k2, (Cin, 1, K, K, K), jnp.float32) * 0.1
    bd = jax.random.normal(k3, (Cin,), jnp.float32) * 0.1
    wp = jax.random.normal(k4, (Cout, Cin, 1, 1, 1), jnp.float32) * 0.1
    bp = jax.random.normal(k5, (Cout,), jnp.float32) * 0.1

    out = depth_sep_conv3d(x, wd, bd, wp, bp, stride=1, padding=1)
    out = jax.block_until_ready(out)

    # Pure-JAX reference (mirrors the two nn.Conv3d layers) for verification.
    y_ref = lax.conv_general_dilated(
        x, wd, window_strides=(1, 1, 1), padding=[(1, 1)] * 3,
        feature_group_count=Cin,
        dimension_numbers=("NCDHW", "OIDHW", "NCDHW"),
        precision=lax.Precision.HIGHEST)
    y_ref = y_ref + bd[None, :, None, None, None]
    ref = lax.conv_general_dilated(
        y_ref, wp, window_strides=(1, 1, 1), padding=[(0, 0)] * 3,
        dimension_numbers=("NCDHW", "OIDHW", "NCDHW"),
        precision=lax.Precision.HIGHEST)
    ref = ref + bp[None, :, None, None, None]

    assert out.shape == (N, Cout, D, H, W)
    assert jnp.allclose(out, ref, atol=1e-4, rtol=1e-4), \
        float(jnp.max(jnp.abs(out - ref)))
    print("KERNEL_OK")
</pallas_src>

<mosaic_0001>
module attributes {stable_mosaic.version = 11 : i64} {
  func.func @_dsconv3d_kernel(%arg0: i32, %arg1: i32, %arg2: i32, %arg3: memref<1x1x10x10x4xf32, #tpu.memory_space<vmem>>, %arg4: memref<1x9x4x8xf32, #tpu.memory_space<vmem>>, %arg5: memref<1x8xf32, #tpu.memory_space<vmem>>, %arg6: memref<1x1x8x8x8xf32, #tpu.memory_space<vmem>>, %arg7: memref<64x8xf32, #tpu.memory_space<vmem>>) attributes {dimension_semantics = [#tpu.dimension_semantics<parallel>, #tpu.dimension_semantics<parallel>, #tpu.dimension_semantics<arbitrary>], iteration_bounds = array<i64: 2, 8, 3>, scalar_prefetch = 0 : i64, scratch_operands = 1 : i64, tpu.core_type = #tpu.core_type<tc>, window_params = [{transform_indices = @transform_0, window_bounds = array<i64: 1, 1, 10, 10, 4>}, {transform_indices = @transform_1, window_bounds = array<i64: 1, 9, 4, 8>}, {pipeline_mode = #tpu.pipeline_mode<synchronous>, transform_indices = @transform_2, window_bounds = array<i64: 1, 8>}, {transform_indices = @transform_3, window_bounds = array<i64: 1, 1, 8, 8, 8>}]} {
    %c0_i32 = arith.constant 0 : i32
    %0 = arith.cmpi eq, %arg2, %c0_i32 : i32
    %1 = arith.extui %0 : i1 to i32
    %c0_i32_0 = arith.constant 0 : i32
    %2 = arith.cmpi ne, %1, %c0_i32_0 : i32
    scf.if %2 {
      %cst_86 = arith.constant 0.000000e+00 : f32
      %71 = vector.broadcast %cst_86 : f32 to vector<64x8xf32>
      %c0_87 = arith.constant 0 : index
      %c0_88 = arith.constant 0 : index
      %72 = vector.load %arg7[%c0_87, %c0_88] : memref<64x8xf32, #tpu.memory_space<vmem>>, vector<64x8xf32>
      tpu.vector_store %arg7[%c0_87, %c0_88], %71 {strides = array<i32>} : memref<64x8xf32, #tpu.memory_space<vmem>>, vector<64x8xf32>,
    } else {
    }
    %c0 = arith.constant 0 : index
    %c0_1 = arith.constant 0 : index
    %3 = vector.load %arg7[%c0, %c0_1] : memref<64x8xf32, #tpu.memory_space<vmem>>, vector<64x8xf32>
    %c0_2 = arith.constant 0 : index
    %c0_3 = arith.constant 0 : index
    %c0_4 = arith.constant 0 : index
    %c0_5 = arith.constant 0 : index
    %c0_6 = arith.constant 0 : index
    %4 = vector.load %arg3[%c0_2, %c0_3, %c0_4, %c0_5, %c0_6] : memref<1x1x10x10x4xf32, #tpu.memory_space<vmem>>, vector<1x1x8x8x4xf32>
    %5 = vector.shape_cast %4 : vector<1x1x8x8x4xf32> to vector<8x8x4xf32>
    %6 = vector.shape_cast %5 : vector<8x8x4xf32> to vector<64x4xf32>
    %c0_7 = arith.constant 0 : index
    %c0_8 = arith.constant 0 : index
    %c0_9 = arith.constant 0 : index
    %c0_10 = arith.constant 0 : index
    %7 = vector.load %arg4[%c0_7, %c0_8, %c0_9, %c0_10] : memref<1x9x4x8xf32, #tpu.memory_space<vmem>>, vector<1x1x4x8xf32>
    %8 = vector.shape_cast %7 : vector<1x1x4x8xf32> to vector<4x8xf32>
    %cst = arith.constant dense<0.000000e+00> : vector<64x8xf32>
    %9 = tpu.matmul %6, %8, %cst {dimension_numbers = #tpu.dot_dimension_numbers<[1], [0], [0], [1], [0, 0, 1, 1], [], []>} : vector<64x4xf32>, vector<4x8xf32>, vector<64x8xf32> -> vector<64x8xf32>
    %10 = arith.addf %3, %9 : vector<64x8xf32>
    %c0_11 = arith.constant 0 : index
    %c0_12 = arith.constant 0 : index
    %c0_13 = arith.constant 0 : index
    %c1 = arith.constant 1 : index
    %c0_14 = arith.constant 0 : index
    %11 = vector.load %arg3[%c0_11, %c0_12, %c0_13, %c1, %c0_14] : memref<1x1x10x10x4xf32, #tpu.memory_space<vmem>>, vector<1x1x8x8x4xf32>
    %12 = vector.shape_cast %11 : vector<1x1x8x8x4xf32> to vector<8x8x4xf32>
    %13 = vector.shape_cast %12 : vector<8x8x4xf32> to vector<64x4xf32>
    %c0_15 = arith.constant 0 : index
    %c1_16 = arith.constant 1 : index
    %c0_17 = arith.constant 0 : index
    %c0_18 = arith.constant 0 : index
    %14 = vector.load %arg4[%c0_15, %c1_16, %c0_17, %c0_18] : memref<1x9x4x8xf32, #tpu.memory_space<vmem>>, vector<1x1x4x8xf32>
    %15 = vector.shape_cast %14 : vector<1x1x4x8xf32> to vector<4x8xf32>
    %cst_19 = arith.constant dense<0.000000e+00> : vector<64x8xf32>
    %16 = tpu.matmul %13, %15, %cst_19 {dimension_numbers = #tpu.dot_dimension_numbers<[1], [0], [0], [1], [0, 0, 1, 1], [], []>} : vector<64x4xf32>, vector<4x8xf32>, vector<64x8xf32> -> vector<64x8xf32>
    %17 = arith.addf %10, %16 : vector<64x8xf32>
    %c0_20 = arith.constant 0 : index
    %c0_21 = arith.constant 0 : index
    %c0_22 = arith.constant 0 : index
    %c2 = arith.constant 2 : index
    %c0_23 = arith.constant 0 : index
    %18 = vector.load %arg3[%c0_20, %c0_21, %c0_22, %c2, %c0_23] : memref<1x1x10x10x4xf32, #tpu.memory_space<vmem>>, vector<1x1x8x8x4xf32>
    %19 = vector.shape_cast %18 : vector<1x1x8x8x4xf32> to vector<8x8x4xf32>
    %20 = vector.shape_cast %19 : vector<8x8x4xf32> to vector<64x4xf32>
    %c0_24 = arith.constant 0 : index
    %c2_25 = arith.constant 2 : index
    %c0_26 = arith.constant 0 : index
    %c0_27 = arith.constant 0 : index
    %21 = vector.load %arg4[%c0_24, %c2_25, %c0_26, %c0_27] : memref<1x9x4x8xf32, #tpu.memory_space<vmem>>, vector<1x1x4x8xf32>
    %22 = vector.shape_cast %21 : vector<1x1x4x8xf32> to vector<4x8xf32>
    %cst_28 = arith.constant dense<0.000000e+00> : vector<64x8xf32>
    %23 = tpu.matmul %20, %22, %cst_28 {dimension_numbers = #tpu.dot_dimension_numbers<[1], [0], [0], [1], [0, 0, 1, 1], [], []>} : vector<64x4xf32>, vector<4x8xf32>, vector<64x8xf32> -> vector<64x8xf32>
    %24 = arith.addf %17, %23 : vector<64x8xf32>
    %c0_29 = arith.constant 0 : index
    %c0_30 = arith.constant 0 : index
    %c1_31 = arith.constant 1 : index
    %c0_32 = arith.constant 0 : index
    %c0_33 = arith.constant 0 : index
    %25 = vector.load %arg3[%c0_29, %c0_30, %c1_31, %c0_32, %c0_33] : memref<1x1x10x10x4xf32, #tpu.memory_space<vmem>>, vector<1x1x8x8x4xf32>
    %26 = vector.shape_cast %25 : vector<1x1x8x8x4xf32> to vector<8x8x4xf32>
    %27 = vector.shape_cast %26 : vector<8x8x4xf32> to vector<64x4xf32>
    %c0_34 = arith.constant 0 : index
    %c3 = arith.constant 3 : index
    %c0_35 = arith.constant 0 : index
    %c0_36 = arith.constant 0 : index
    %28 = vector.load %arg4[%c0_34, %c3, %c0_35, %c0_36] : memref<1x9x4x8xf32, #tpu.memory_space<vmem>>, vector<1x1x4x8xf32>
    %29 = vector.shape_cast %28 : vector<1x1x4x8xf32> to vector<4x8xf32>
    %cst_37 = arith.constant dense<0.000000e+00> : vector<64x8xf32>
    %30 = tpu.matmul %27, %29, %cst_37 {dimension_numbers = #tpu.dot_dimension_numbers<[1], [0], [0], [1], [0, 0, 1, 1], [], []>} : vector<64x4xf32>, vector<4x8xf32>, vector<64x8xf32> -> vector<64x8xf32>
    %31 = arith.addf %24, %30 : vector<64x8xf32>
    %c0_38 = arith.constant 0 : index
    %c0_39 = arith.constant 0 : index
    %c1_40 = arith.constant 1 : index
    %c1_41 = arith.constant 1 : index
    %c0_42 = arith.constant 0 : index
    %32 = vector.load %arg3[%c0_38, %c0_39, %c1_40, %c1_41, %c0_42] : memref<1x1x10x10x4xf32, #tpu.memory_space<vmem>>, vector<1x1x8x8x4xf32>
    %33 = vector.shape_cast %32 : vector<1x1x8x8x4xf32> to vector<8x8x4xf32>
    %34 = vector.shape_cast %33 : vector<8x8x4xf32> to vector<64x4xf32>
    %c0_43 = arith.constant 0 : index
    %c4 = arith.constant 4 : index
    %c0_44 = arith.constant 0 : index
    %c0_45 = arith.constant 0 : index
    %35 = vector.load %arg4[%c0_43, %c4, %c0_44, %c0_45] : memref<1x9x4x8xf32, #tpu.memory_space<vmem>>, vector<1x1x4x8xf32>
    %36 = vector.shape_cast %35 : vector<1x1x4x8xf32> to vector<4x8xf32>
    %cst_46 = arith.constant dense<0.000000e+00> : vector<64x8xf32>
    %37 = tpu.matmul %34, %36, %cst_46 {dimension_numbers = #tpu.dot_dimension_numbers<[1], [0], [0], [1], [0, 0, 1, 1], [], []>} : vector<64x4xf32>, vector<4x8xf32>, vector<64x8xf32> -> vector<64x8xf32>
    %38 = arith.addf %31, %37 : vector<64x8xf32>
    %c0_47 = arith.constant 0 : index
    %c0_48 = arith.constant 0 : index
    %c1_49 = arith.constant 1 : index
    %c2_50 = arith.constant 2 : index
    %c0_51 = arith.constant 0 : index
    %39 = vector.load %arg3[%c0_47, %c0_48, %c1_49, %c2_50, %c0_51] : memref<1x1x10x10x4xf32, #tpu.memory_space<vmem>>, vector<1x1x8x8x4xf32>
    %40 = vector.shape_cast %39 : vector<1x1x8x8x4xf32> to vector<8x8x4xf32>
    %41 = vector.shape_cast %40 : vector<8x8x4xf32> to vector<64x4xf32>
    %c0_52 = arith.constant 0 : index
    %c5 = arith.constant 5 : index
    %c0_53 = arith.constant 0 : index
    %c0_54 = arith.constant 0 : index
    %42 = vector.load %arg4[%c0_52, %c5, %c0_53, %c0_54] : memref<1x9x4x8xf32, #tpu.memory_space<vmem>>, vector<1x1x4x8xf32>
    %43 = vector.shape_cast %42 : vector<1x1x4x8xf32> to vector<4x8xf32>
    %cst_55 = arith.constant dense<0.000000e+00> : vector<64x8xf32>
    %44 = tpu.matmul %41, %43, %cst_55 {dimension_numbers = #tpu.dot_dimension_numbers<[1], [0], [0], [1], [0, 0, 1, 1], [], []>} : vector<64x4xf32>, vector<4x8xf32>, vector<64x8xf32> -> vector<64x8xf32>
    %45 = arith.addf %38, %44 : vector<64x8xf32>
    %c0_56 = arith.constant 0 : index
    %c0_57 = arith.constant 0 : index
    %c2_58 = arith.constant 2 : index
    %c0_59 = arith.constant 0 : index
    %c0_60 = arith.constant 0 : index
    %46 = vector.load %arg3[%c0_56, %c0_57, %c2_58, %c0_59, %c0_60] : memref<1x1x10x10x4xf32, #tpu.memory_space<vmem>>, vector<1x1x8x8x4xf32>
    %47 = vector.shape_cast %46 : vector<1x1x8x8x4xf32> to vector<8x8x4xf32>
    %48 = vector.shape_cast %47 : vector<8x8x4xf32> to vector<64x4xf32>
    %c0_61 = arith.constant 0 : index
    %c6 = arith.constant 6 : index
    %c0_62 = arith.constant 0 : index
    %c0_63 = arith.constant 0 : index
    %49 = vector.load %arg4[%c0_61, %c6, %c0_62, %c0_63] : memref<1x9x4x8xf32, #tpu.memory_space<vmem>>, vector<1x1x4x8xf32>
    %50 = vector.shape_cast %49 : vector<1x1x4x8xf32> to vector<4x8xf32>
    %cst_64 = arith.constant dense<0.000000e+00> : vector<64x8xf32>
    %51 = tpu.matmul %48, %50, %cst_64 {dimension_numbers = #tpu.dot_dimension_numbers<[1], [0], [0], [1], [0, 0, 1, 1], [], []>} : vector<64x4xf32>, vector<4x8xf32>, vector<64x8xf32> -> vector<64x8xf32>
    %52 = arith.addf %45, %51 : vector<64x8xf32>
    %c0_65 = arith.constant 0 : index
    %c0_66 = arith.constant 0 : index
    %c2_67 = arith.constant 2 : index
    %c1_68 = arith.constant 1 : index
    %c0_69 = arith.constant 0 : index
    %53 = vector.load %arg3[%c0_65, %c0_66, %c2_67, %c1_68, %c0_69] : memref<1x1x10x10x4xf32, #tpu.memory_space<vmem>>, vector<1x1x8x8x4xf32>
    %54 = vector.shape_cast %53 : vector<1x1x8x8x4xf32> to vector<8x8x4xf32>
    %55 = vector.shape_cast %54 : vector<8x8x4xf32> to vector<64x4xf32>
    %c0_70 = arith.constant 0 : index
    %c7 = arith.constant 7 : index
    %c0_71 = arith.constant 0 : index
    %c0_72 = arith.constant 0 : index
    %56 = vector.load %arg4[%c0_70, %c7, %c0_71, %c0_72] : memref<1x9x4x8xf32, #tpu.memory_space<vmem>>, vector<1x1x4x8xf32>
    %57 = vector.shape_cast %56 : vector<1x1x4x8xf32> to vector<4x8xf32>
    %cst_73 = arith.constant dense<0.000000e+00> : vector<64x8xf32>
    %58 = tpu.matmul %55, %57, %cst_73 {dimension_numbers = #tpu.dot_dimension_numbers<[1], [0], [0], [1], [0, 0, 1, 1], [], []>} : vector<64x4xf32>, vector<4x8xf32>, vector<64x8xf32> -> vector<64x8xf32>
    %59 = arith.addf %52, %58 : vector<64x8xf32>
    %c0_74 = arith.constant 0 : index
    %c0_75 = arith.constant 0 : index
    %c2_76 = arith.constant 2 : index
    %c2_77 = arith.constant 2 : index
    %c0_78 = arith.constant 0 : index
    %60 = vector.load %arg3[%c0_74, %c0_75, %c2_76, %c2_77, %c0_78] : memref<1x1x10x10x4xf32, #tpu.memory_space<vmem>>, vector<1x1x8x8x4xf32>
    %61 = vector.shape_cast %60 : vector<1x1x8x8x4xf32> to vector<8x8x4xf32>
    %62 = vector.shape_cast %61 : vector<8x8x4xf32> to vector<64x4xf32>
    %c0_79 = arith.constant 0 : index
    %c8 = arith.constant 8 : index
    %c0_80 = arith.constant 0 : index
    %c0_81 = arith.constant 0 : index
    %63 = vector.load %arg4[%c0_79, %c8, %c0_80, %c0_81] : memref<1x9x4x8xf32, #tpu.memory_space<vmem>>, vector<1x1x4x8xf32>
    %64 = vector.shape_cast %63 : vector<1x1x4x8xf32> to vector<4x8xf32>
    %cst_82 = arith.constant dense<0.000000e+00> : vector<64x8xf32>
    %65 = tpu.matmul %62, %64, %cst_82 {dimension_numbers = #tpu.dot_dimension_numbers<[1], [0], [0], [1], [0, 0, 1, 1], [], []>} : vector<64x4xf32>, vector<4x8xf32>, vector<64x8xf32> -> vector<64x8xf32>
    %66 = arith.addf %59, %65 : vector<64x8xf32>
    %c0_83 = arith.constant 0 : index
    %c0_84 = arith.constant 0 : index
    %67 = vector.load %arg7[%c0_83, %c0_84] : memref<64x8xf32, #tpu.memory_space<vmem>>, vector<64x8xf32>
    tpu.vector_store %arg7[%c0_83, %c0_84], %66 {strides = array<i32>} : memref<64x8xf32, #tpu.memory_space<vmem>>, vector<64x8xf32>,
    %c2_i32 = arith.constant 2 : i32
    %68 = arith.cmpi eq, %arg2, %c2_i32 : i32
    %69 = arith.extui %68 : i1 to i32
    %c0_i32_85 = arith.constant 0 : i32
    %70 = arith.cmpi ne, %69, %c0_i32_85 : i32
    scf.if %70 {
      %c0_86 = arith.constant 0 : index
      %c0_87 = arith.constant 0 : index
      %71 = vector.load %arg7[%c0_86, %c0_87] : memref<64x8xf32, #tpu.memory_space<vmem>>, vector<64x8xf32>
      %c0_88 = arith.constant 0 : index
      %c0_89 = arith.constant 0 : index
      %72 = vector.load %arg5[%c0_88, %c0_89] : memref<1x8xf32, #tpu.memory_space<vmem>>, vector<1x8xf32>
      %73 = vector.shape_cast %72 : vector<1x8xf32> to vector<8xf32>
      %74 = vector.shape_cast %73 : vector<8xf32> to vector<1x8xf32>
      %75 = vector.broadcast %74 : vector<1x8xf32> to vector<64x8xf32>
      %76 = arith.addf %71, %75 : vector<64x8xf32>
      %77 = vector.shape_cast %76 : vector<64x8xf32> to vector<8x8x8xf32>
      %c0_90 = arith.constant 0 : index
      %c0_91 = arith.constant 0 : index
      %c0_92 = arith.constant 0 : index
      %c0_93 = arith.constant 0 : index
      %c0_94 = arith.constant 0 : index
      %78 = vector.load %arg6[%c0_90, %c0_91, %c0_92, %c0_93, %c0_94] : memref<1x1x8x8x8xf32, #tpu.memory_space<vmem>>, vector<1x1x8x8x8xf32>
      %79 = vector.shape_cast %78 : vector<1x1x8x8x8xf32> to vector<8x8x8xf32>
      %80 = vector.shape_cast %77 : vector<8x8x8xf32> to vector<1x1x8x8x8xf32>
      tpu.vector_store %arg6[%c0_90, %c0_91, %c0_92, %c0_93, %c0_94], %80 {strides = array<i32>} : memref<1x1x8x8x8xf32, #tpu.memory_space<vmem>>, vector<1x1x8x8x8xf32>,
    } else {
    }
    return
  }
  func.func @transform_0(%arg0: i32, %arg1: i32, %arg2: i32) -> (i32, i32, i32, i32, i32) {
    %c1_i32 = arith.constant 1 : i32
    %0 = arith.muli %arg1, %c1_i32 : i32
    %1 = arith.addi %0, %arg2 : i32
    %c0_i32 = arith.constant 0 : i32
    %c0_i32_0 = arith.constant 0 : i32
    %c0_i32_1 = arith.constant 0 : i32
    %c0_i32_2 = arith.constant 0 : i32
    return %arg0, %1, %c0_i32, %c0_i32_0, %c0_i32_1 : i32, i32, i32, i32, i32
  }
  func.func @transform_1(%arg0: i32, %arg1: i32, %arg2: i32) -> (i32, i32, i32, i32) {
    %c0_i32 = arith.constant 0 : i32
    %c0_i32_0 = arith.constant 0 : i32
    %c0_i32_1 = arith.constant 0 : i32
    %c0_i32_2 = arith.constant 0 : i32
    return %arg2, %c0_i32, %c0_i32_0, %c0_i32_1 : i32, i32, i32, i32
  }
  func.func @transform_2(%arg0: i32, %arg1: i32, %arg2: i32) -> (i32, i32) {
    %c0_i32 = arith.constant 0 : i32
    %c0_i32_0 = arith.constant 0 : i32
    %c0_i32_1 = arith.constant 0 : i32
    return %c0_i32, %c0_i32_0 : i32, i32
  }
  func.func @transform_3(%arg0: i32, %arg1: i32, %arg2: i32) -> (i32, i32, i32, i32, i32) {
    %c0_i32 = arith.constant 0 : i32
    %c0_i32_0 = arith.constant 0 : i32
    %c0_i32_1 = arith.constant 0 : i32
    %c0_i32_2 = arith.constant 0 : i32
    return %arg0, %arg1, %c0_i32, %c0_i32_0, %c0_i32_1 : i32, i32, i32, i32, i32
  }
}

</mosaic_0001>

<bundles_post_ra>
// kernel: tpu_custom_call.1
= control target key start
LH: loop header
LB: loop body
LE: loop exit
PB: predicated region body
PF: predicated region fallthrough
CT: control target
= control target key end

     0   :  { %8 = vsyncpa [#allocation4], 0  ;;  %s2803_s0 = inlined_call_operand.vmem [shape: f32[2,10,10,10,4], index: 0, kind: input, shape index: {}]   ;;  %s2804_s1 = inlined_call_operand.vmem [shape: f32[3,9,4,8], index: 1, kind: input, shape index: {}]   ;;  %s2805_s2 = inlined_call_operand.vmem [shape: f32[1,8], index: 2, kind: input, shape index: {}]   ;;  %s2806_s3 = inlined_call_operand.hbm [shape: f32[2,8,8,8,8], index: 3, kind: output, shape index: {}]  }
   0x1   :  { %10 = vsyncpa [#allocation4 + $0x1], 0  ;;  %s2358_s12 = smov 0   ;;  %s2360_s13 = smov 0  }
   0x2   :  { %s2362_s14 = smov 0   ;;  %s2364_s15 = smov 0  }
   0x3   :  { %s2366_s16 = smov 0   ;;  %s2368_s17 = smov 0  }
   0x4   :  { %s2370_s18 = smov 0   ;;  %s2372_s19 = smov 0  }
   0x5   :  { %s2374_s20 = smov 0   ;;  %s2376_s21 = smov 0  }
   0x6 LB: > { %2812 = sst [smem:[#allocation6_spill]] %s2324_s19  ;;  %s1768_s22 = sadd.s32 4294967295, %s2332_s21   ;;  %s2332_s21 = sphi %s2376_s21, %s16_s21   ;;  %s2328_s20 = sphi %s2374_s20, %s2824_s20   ;;  %s2324_s19 = sphi %s2372_s19, %s2823_s19   ;;  %s2320_s18 = sphi %s2370_s18, %s2829_s18   ;;  %s2316_s17 = sphi %s2368_s17, %s2821_s17   ;;  %s2312_s16 = sphi %s2366_s16, %s2820_s16   ;;  %s2308_s15 = sphi %s2364_s15, %s2828_s15   ;;  %s2304_s14 = sphi %s2362_s14, %s2827_s14   ;;  %s2300_s13 = sphi %s2360_s13, %s2826_s13   ;;  %s2296_s12 = sphi %s2358_s12, %s2825_s12  }
   0x7   : > { %2813 = sst [smem:[#allocation7_spill]] %s2328_s20  ;;  %s1769_s23 = sadd.s32 4294967294, %s2332_s21  }
   0x8   : > { %s28_s24 = sadd.s32 1, %s2320_s18  ;;  %s31_s25 = sadd.s32 1, %s2324_s19 }
   0x9   : > { %p29_p0 = scmp.ge.s32.totalorder %s28_s24, 3  ;;  %s35_s26 = sadd.s32 1, %s2328_s20 }
   0xa   : > { %p131_p1 = scmp.ne.s32.totalorder %s2304_s14, %s2300_s13  ;;  %p132_p2 = scmp.eq.s32.totalorder %s1768_s22, 47 }
   0xb   : > { %s2831_s24 = smov (%p29_p0, %s28_s24), 0  ;;  %s2833_s25 = smov (!%p29_p0, %s31_s25), %s2324_s19 }
   0xc   : > { %2814 = sst [smem:[#allocation8_spill]] %s2831_s24  ;;  %p137_p3 = scmp.ne.s32.totalorder %s2300_s13, %s2296_s12 }
   0xd   : > { %p33_p4 = scmp.ge.s32.totalorder %s2833_s25, 8  ;;  %p138_p5 = scmp.eq.s32.totalorder %s1769_s23, 47 }
   0xe   : > { %p2420_p6 = por %p132_p2, %p131_p1  ;;  %p1772_p8 = scmp.ge.s32.totalorder %s2332_s21, 1 }
   0xf   : > { %s2835_s25 = smov (%p33_p4, %s2833_s25), 0  ;;  %s2837_s26 = smov (!%p33_p4, %s35_s26), %s2328_s20 }
  0x10   : > { %2816 = sst [smem:[#allocation9_spill]] %s2835_s25  ;;  %p2427_p7 = por %p138_p5, %p137_p3 }
  0x11   : > { %p37_p9 = scmp.ge.s32.totalorder %s2837_s26, 2  ;;  %p181_p10 = scmp.lt.s32.totalorder %s2332_s21, 49 }
  0x12   : > { %s117_s29 = ssub.s32 %s2324_s19, %s2835_s25  ;;  %s121_s5 = sadd.s32 1, %s2304_s14 }
  0x13   : > { %s2839_s26 = smov (%p37_p9, %s2837_s26), 0  ;;  %p182_p11 = pnand %p1772_p8, %p181_p10 }
  0x14   : > { %2818 = sst [smem:[#allocation10_spill]] %s2839_s26  ;;  %s116_s30 = ssub.s32 %s2328_s20, %s2839_s26 }
  0x15   : > { %s118_s4 = sor.u32 %s117_s29, %s116_s30  ;;  %185 = sbr.rel (%p182_p11) target bundleno = 350 (0x15e), region = 32 }
  0x16   : > { %p119_p12 = scmp.eq.s32.totalorder %s118_s4, 0  ;;  %s2810_s7 = sand.u32 (!%p182_p11), 1, %s2300_s13  }
  0x17   : > { %s215_s8 = sadd.s32 (!%p182_p11), %s2308_s15, %s2312_s16  ;;  %s1773_s9 = sshll.u32 (!%p182_p11), %s2810_s7, 6 }
  0x18   : > { %s2441_s6 = scalar_select %p119_p12, %s2304_s14, %s121_s5  }
  0x19   : > { %p216_p13 = scmp.lt.s32.totalorder (!%p182_p11), %s2316_s17, 1  ;;  %p218_p0 = scmp.lt.s32.totalorder (!%p182_p11), %s215_s8, 9 }
  0x1a   : > { %p226_p1 = scmp.lt.s32.totalorder %s2308_s15, 2  ;;  %s2462_s19 = scalar_lea.vmem [#allocation3], %s1773_s9 }
  0x1b   : > { %s217_s10 = scalar_select %p216_p13, %s2316_s17, 1 }
  0x1c   : > { %s2841_s8 = smov (!%p218_p0, %s215_s8), 9  ;;  %p1776_p2 = scmp.ne.s32.totalorder %s2308_s15, 0 }
  0x1d   : > { %s2132_s11 = smul.u32 200, %s217_s10 }
  0x1e   : > { %s2131_s22 = smul.u32 20, %s2841_s8 }
  0x1f   : > { %s227_s23 = scalar_select %p226_p1, %s2308_s15, 2 }
  0x20   : > { %s222_s29 = sadd.s32 %s2132_s11, %s2131_s22  ;;  %234 = sbr.rel (%p1776_p2) target bundleno = 42 (0x2a), region = 36 }
  0x21   : > { %s1774_s30 = sshll.u32 %s222_s29, 3  ;;  %s2133_s4 = smul.u32 36, %s227_s23 }
  0x22   : > { %s2455_s25 = scalar_lea.vmem %s2803_s0, %s1774_s30 }
  0x23   : > { %s2460_s7 = scalar_lea.vmem %s2804_s1, %s2133_s4 }
  0x25   : > { %vm235_vm0 = vcmask 64512   ;;  %v2334_v0 = vmov 0.0  }
  0x26   : > { %236 = vst.msk [vmem:[#allocation2] sm:$0xff] %vm235_vm0, %v2334_v0  ;;  %237 = vst.msk [vmem:[#allocation2 + $0x8] sm:$0xff] %vm235_vm0, %v2334_v0 }
  0x27   : > { %238 = vst.msk [vmem:[#allocation2 + $0x10] sm:$0xff] %vm235_vm0, %v2334_v0  ;;  %239 = vst.msk [vmem:[#allocation2 + $0x18] sm:$0xff] %vm235_vm0, %v2334_v0 }
  0x28   : > { %240 = vst.msk [vmem:[#allocation2 + $0x20] sm:$0xff] %vm235_vm0, %v2334_v0  ;;  %241 = vst.msk [vmem:[#allocation2 + $0x28] sm:$0xff] %vm235_vm0, %v2334_v0 }
  0x29   : > { %242 = vst.msk [vmem:[#allocation2 + $0x30] sm:$0xff] %vm235_vm0, %v2334_v0  ;;  %243 = vst.msk [vmem:[#allocation2 + $0x38] sm:$0xff] %vm235_vm0, %v2334_v0 }
  0x2a PF: > { %v260_v1 = vld [vmem:[%s2460_s7] sm:$0xf]  ;;  %vm286_vm1 = vcmask 1043456   ;;  %vm261_vm2 = vcmask 31744   ;;  %v2473_v4 = vld [vmem:[%s2455_s25 + $0x50] sm:$0xff]  ;;  %vm1605_vm3 = vcmask 64512  }
  0x2b   : > { %v2467_v2 = vld [vmem:[%s2455_s25 + $0x40] sm:$0xff]  ;;  %2129 = vmatprep.subr.msk.mxu1 %vm286_vm1, %v260_v1  ;;  %2003 = vmatprep.subr.msk.mxu0 %vm286_vm1, %v260_v1  ;;  %v253_v6 = vld [vmem:[%s2455_s25 + $0x10] sm:$0xff]  ;;  %v1796_v7 = vld [vmem:[%s2460_s7 + $0x8] sm:$0xf]  ;;  %p1914_p3 = scmp.ne.s32.totalorder %s2308_s15, 2 }
  0x2c   : > { %v252_v3 = vld [vmem:[%s2455_s25] sm:$0xff]  ;;  %2130 = vmatpush3.msk.msra.mxu1 %vm286_vm1, %v260_v1  ;;  %2011 = vmatprep.mubr.msk.f32.mxu1 %vm261_vm2, %v2467_v2  ;;  %v2495_v10 = vld [vmem:[%s2455_s25 + $0x70] sm:$0xff]  ;;  %v1814_v11 = vld [vmem:[%s2460_s7 + $0xc] sm:$0xf] }
  0x2d   : > { %v1786_v5 = vld [vmem:[%s2460_s7 + $0x4] sm:$0xf]  ;;  %2004 = vmatpush3.msk.msra.mxu0 %vm286_vm1, %v260_v1  ;;  %2005 = vmatprep.mubr.msk.f32.mxu0 %vm261_vm2, %v252_v3  ;;  %v2502_v12 = vld [vmem:[%s2455_s25 + $0x30] sm:$0xff]  ;;  %v1868_v22 = vld [vmem:[%s2460_s7 + $0x18] sm:$0xf] }
  0x2e   : > { %v2484_v8 = vld [vmem:[%s2455_s25 + $0x60] sm:$0xff]  ;;  %2012 = vmatmul.mubr.msk.f32.vlgmr.msra.gmra.mxu1 %vm261_vm2, %v2473_v4  ;;  %2017 = vmatprep.subr.msk.mxu1 %vm286_vm1, %v1786_v5  ;;  %v1832_v15 = vld [vmem:[%s2460_s7 + $0x10] sm:$0xf]  ;;  %v1850_v20 = vld [vmem:[%s2460_s7 + $0x14] sm:$0xf] }
  0x2f   : > { %v2490_v9 = vld [vmem:[%s2455_s25 + $0x20] sm:$0xff]  ;;  %2006 = vmatmul.mubr.msk.f32.vlgmr.msra.gmra.mxu0 %vm261_vm2, %v253_v6  ;;  %2018 = vmatpush3.msk.msra.mxu1 %vm286_vm1, %v1786_v5  ;;  %v404_v16 = vld [vmem:[%s2455_s25 + $0x11] sm:$0xff]  ;;  %v1886_v32 = vld [vmem:[%s2460_s7 + $0x1c] sm:$0xf] }
  0x30   : > { %2031 = vmatprep.subr.msk.mxu0 %vm286_vm1, %v1796_v7  ;;  %2014 = vmatprep.mubr.msk.f32.mxu1 %vm261_vm2, %v2484_v8  ;;  %v403_v13 = vld [vmem:[%s2455_s25 + $0x1] sm:$0xff]  ;;  %v554_v17 = vld [vmem:[%s2455_s25 + $0x12] sm:$0xff] }
  0x31   : > { %2032 = vmatpush3.msk.msra.mxu0 %vm286_vm1, %v1796_v7  ;;  %2008 = vmatprep.mubr.msk.f32.mxu0 %vm261_vm2, %v2490_v9  ;;  %v553_v14 = vld [vmem:[%s2455_s25 + $0x2] sm:$0xff]  ;;  %v2531_v21 = vld [vmem:[%s2455_s25 + $0x31] sm:$0xff] }
  0x32   : > { %2015 = vmatmul.mubr.msk.f32.gmra.mxu1 %vm261_vm2, %v2495_v10  ;;  %2045 = vmatprep.subr.msk.mxu1 %vm286_vm1, %v1814_v11  ;;  %v2521_v18 = vld [vmem:[%s2455_s25 + $0x21] sm:$0xff]  ;;  %v2538_v23 = vld [vmem:[%s2455_s25 + $0x32] sm:$0xff] }
  0x33   : > { %2009 = vmatmul.mubr.msk.f32.gmra.mxu0 %vm261_vm2, %v2502_v12  ;;  %2019 = vmatprep.mubr.msk.f32.mxu1 %vm261_vm2, %v403_v13  ;;  %v2525_v19 = vld [vmem:[%s2455_s25 + $0x22] sm:$0xff]  ;;  %v2557_v26 = vld [vmem:[%s2455_s25 + $0x51] sm:$0xff] }
  0x34   : > { %2033 = vmatprep.mubr.msk.f32.mxu0 %vm261_vm2, %v553_v14  ;;  %2059 = vmatprep.subr.msk.mxu0 %vm286_vm1, %v1832_v15  ;;  %v2541_v24 = vld [vmem:[%s2455_s25 + $0x41] sm:$0xff]  ;;  %v558_v27 = vld [vmem:[%s2455_s25 + $0x52] sm:$0xff] }
  0x35   : > { %v2546_v25 = vld [vmem:[%s2455_s25 + $0x42] sm:$0xff]  ;;  %v410_v30 = vld [vmem:[%s2455_s25 + $0x71] sm:$0xff] }
  0x36   : > { %2020 = vmatmul.mubr.msk.f32.vlgmr.msra.gmra.mxu1 %vm261_vm2, %v404_v16  ;;  %v409_v28 = vld [vmem:[%s2455_s25 + $0x61] sm:$0xff]  ;;  %v560_v31 = vld [vmem:[%s2455_s25 + $0x72] sm:$0xff] }
  0x37   : > { %2034 = vmatmul.mubr.msk.f32.vlgmr.msra.gmra.mxu0 %vm261_vm2, %v554_v17  ;;  %2046 = vmatpush3.msk.msra.mxu1 %vm286_vm1, %v1814_v11  ;;  %v559_v29 = vld [vmem:[%s2455_s25 + $0x62] sm:$0xff]  ;;  %v1867_v37 = vld [vmem:[%s2455_s25 + $0x90] sm:$0xff] }
  0x38   : > { %2022 = vmatprep.mubr.msk.f32.mxu1 %vm261_vm2, %v2521_v18  ;;  %2060 = vmatpush3.msk.msra.mxu0 %vm286_vm1, %v1832_v15  ;;  %v1904_v33 = vld [vmem:[%s2460_s7 + $0x20] sm:$0xf]  ;;  %v1885_v38 = vld [vmem:[%s2455_s25 + $0x91] sm:$0xff] }
  0x39   : > { %2036 = vmatprep.mubr.msk.f32.mxu0 %vm261_vm2, %v2525_v19  ;;  %2073 = vmatprep.subr.msk.mxu1 %vm286_vm1, %v1850_v20  ;;  %v1813_v34 = vld [vmem:[%s2455_s25 + $0x80] sm:$0xff]  ;;  %v1903_v39 = vld [vmem:[%s2455_s25 + $0x92] sm:$0xff] }
  0x3a   : > { %2023 = vmatmul.mubr.msk.f32.gmra.mxu1 %vm261_vm2, %v2531_v21  ;;  %2087 = vmatprep.subr.msk.mxu0 %vm286_vm1, %v1868_v22  ;;  %v1831_v35 = vld [vmem:[%s2455_s25 + $0x81] sm:$0xff] }
  0x3b   : > { %2037 = vmatmul.mubr.msk.f32.gmra.mxu0 %vm261_vm2, %v2538_v23  ;;  %2025 = vmatprep.mubr.msk.f32.mxu1 %vm261_vm2, %v2541_v24  ;;  %v1849_v36 = vld [vmem:[%s2455_s25 + $0x82] sm:$0xff] }
  0x3c   : > { %2039 = vmatprep.mubr.msk.f32.mxu0 %vm261_vm2, %v2546_v25  ;;  %v244_v13 = vld [vmem:[#allocation2] sm:$0xff] }
  0x3e   : > { %2026 = vmatmul.mubr.msk.f32.gmra.mxu1 %vm261_vm2, %v2557_v26 }
  0x3f   : > { %2040 = vmatmul.mubr.msk.f32.gmra.mxu0 %vm261_vm2, %v558_v27  ;;  %2028 = vmatprep.mubr.msk.f32.mxu1 %vm261_vm2, %v409_v28 }
  0x40   : > { %2042 = vmatprep.mubr.msk.f32.mxu0 %vm261_vm2, %v559_v29 }
  0x42   : > { %2029 = vmatmul.mubr.msk.f32.gmra.mxu1 %vm261_vm2, %v410_v30 }
  0x43   : > { %2043 = vmatmul.mubr.msk.f32.gmra.mxu0 %vm261_vm2, %v560_v31  ;;  %2047 = vmatprep.mubr.msk.f32.mxu1 %vm261_vm2, %v253_v6 }
  0x44   : > { %2061 = vmatprep.mubr.msk.f32.mxu0 %vm261_vm2, %v404_v16 }
  0x46   : > { %2048 = vmatmul.mubr.msk.f32.vlgmr.msra.gmra.mxu1 %vm261_vm2, %v2490_v9 }
  0x47   : > { %2062 = vmatmul.mubr.msk.f32.vlgmr.msra.gmra.mxu0 %vm261_vm2, %v2521_v18  ;;  %2074 = vmatpush3.msk.msra.mxu1 %vm286_vm1, %v1850_v20 }
  0x48   : > { %2050 = vmatprep.mubr.msk.f32.mxu1 %vm261_vm2, %v2502_v12  ;;  %2088 = vmatpush3.msk.msra.mxu0 %vm286_vm1, %v1868_v22  ;;  %v246_v22 = vld [vmem:[#allocation2 + $0x10] sm:$0xff] }
  0x49   : > { %2064 = vmatprep.mubr.msk.f32.mxu0 %vm261_vm2, %v2531_v21  ;;  %2101 = vmatprep.subr.msk.mxu1 %vm286_vm1, %v1886_v32 }
  0x4a   : > { %2051 = vmatmul.mubr.msk.f32.gmra.mxu1 %vm261_vm2, %v2467_v2  ;;  %2115 = vmatprep.subr.msk.mxu0 %vm286_vm1, %v1904_v33 }
  0x4b   : > { %2065 = vmatmul.mubr.msk.f32.gmra.mxu0 %vm261_vm2, %v2541_v24  ;;  %2053 = vmatprep.mubr.msk.f32.mxu1 %vm261_vm2, %v2473_v4 }
  0x4c   : > { %2067 = vmatprep.mubr.msk.f32.mxu0 %vm261_vm2, %v2557_v26 }
  0x4e   : > { %2054 = vmatmul.mubr.msk.f32.gmra.mxu1 %vm261_vm2, %v2484_v8 }
  0x4f   : > { %2068 = vmatmul.mubr.msk.f32.gmra.mxu0 %vm261_vm2, %v409_v28  ;;  %2056 = vmatprep.mubr.msk.f32.mxu1 %vm261_vm2, %v2495_v10 }
  0x50   : > { %2070 = vmatprep.mubr.msk.f32.mxu0 %vm261_vm2, %v410_v30 }
  0x52   : > { %2057 = vmatmul.mubr.msk.f32.gmra.mxu1 %vm261_vm2, %v1813_v34 }
  0x53   : > { %2071 = vmatmul.mubr.msk.f32.gmra.mxu0 %vm261_vm2, %v1831_v35  ;;  %2075 = vmatprep.mubr.msk.f32.mxu1 %vm261_vm2, %v554_v17  ;;  %v247_v17 = vld [vmem:[#allocation2 + $0x18] sm:$0xff] }
  0x54   : > { %2089 = vmatprep.mubr.msk.f32.mxu0 %vm261_vm2, %v2490_v9 }
  0x56   : > { %2076 = vmatmul.mubr.msk.f32.vlgmr.msra.gmra.mxu1 %vm261_vm2, %v2525_v19 }
  0x57   : > { %2090 = vmatmul.mubr.msk.f32.vlgmr.msra.gmra.mxu0 %vm261_vm2, %v2502_v12  ;;  %2102 = vmatpush3.msk.msra.mxu1 %vm286_vm1, %v1886_v32 }
  0x58   : > { %2078 = vmatprep.mubr.msk.f32.mxu1 %vm261_vm2, %v2538_v23  ;;  %2116 = vmatpush3.msk.msra.mxu0 %vm286_vm1, %v1904_v33 }
  0x59   : > { %2092 = vmatprep.mubr.msk.f32.mxu0 %vm261_vm2, %v2467_v2 }
  0x5a   : > { %2079 = vmatmul.mubr.msk.f32.gmra.mxu1 %vm261_vm2, %v2546_v25 }
  0x5b   : > { %2093 = vmatmul.mubr.msk.f32.gmra.mxu0 %vm261_vm2, %v2473_v4  ;;  %2081 = vmatprep.mubr.msk.f32.mxu1 %vm261_vm2, %v558_v27 }
  0x5c   : > { %2095 = vmatprep.mubr.msk.f32.mxu0 %vm261_vm2, %v2484_v8 }
  0x5e   : > { %2082 = vmatmul.mubr.msk.f32.gmra.mxu1 %vm261_vm2, %v559_v29 }
  0x5f   : > { %2096 = vmatmul.mubr.msk.f32.gmra.mxu0 %vm261_vm2, %v2495_v10  ;;  %2084 = vmatprep.mubr.msk.f32.mxu1 %vm261_vm2, %v560_v31  ;;  %v245_v10 = vld [vmem:[#allocation2 + $0x8] sm:$0xff] }
  0x60   : > { %2098 = vmatprep.mubr.msk.f32.mxu0 %vm261_vm2, %v1813_v34 }
  0x62   : > { %2085 = vmatmul.mubr.msk.f32.gmra.mxu1 %vm261_vm2, %v1849_v36 }
  0x63   : > { %2099 = vmatmul.mubr.msk.f32.gmra.mxu0 %vm261_vm2, %v1867_v37  ;;  %2103 = vmatprep.mubr.msk.f32.mxu1 %vm261_vm2, %v2521_v18 }
  0x64   : > { %2117 = vmatprep.mubr.msk.f32.mxu0 %vm261_vm2, %v2525_v19 }
  0x66   : > { %2104 = vmatmul.mubr.msk.f32.vlgmr.msra.gmra.mxu1 %vm261_vm2, %v2531_v21 }
  0x67   : > { %2118 = vmatmul.mubr.msk.f32.vlgmr.msra.gmra.mxu0 %vm261_vm2, %v2538_v23  ;;  %2106 = vmatprep.mubr.msk.f32.mxu1 %vm261_vm2, %v2541_v24 }
  0x68   : > { %2120 = vmatprep.mubr.msk.f32.mxu0 %vm261_vm2, %v2546_v25 }
  0x6a   : > { %2107 = vmatmul.mubr.msk.f32.gmra.mxu1 %vm261_vm2, %v2557_v26 }
  0x6b   : > { %2121 = vmatmul.mubr.msk.f32.gmra.mxu0 %vm261_vm2, %v558_v27  ;;  %2109 = vmatprep.mubr.msk.f32.mxu1 %vm261_vm2, %v409_v28  ;;  %v249_v27 = vld [vmem:[#allocation2 + $0x28] sm:$0xff] }
  0x6c   : > { %2123 = vmatprep.mubr.msk.f32.mxu0 %vm261_vm2, %v559_v29  ;;  %v248_v29 = vld [vmem:[#allocation2 + $0x20] sm:$0xff] }
  0x6e   : > { %2110 = vmatmul.mubr.msk.f32.gmra.mxu1 %vm261_vm2, %v410_v30 }
  0x6f   : > { %2124 = vmatmul.mubr.msk.f32.gmra.mxu0 %vm261_vm2, %v560_v31  ;;  %2112 = vmatprep.mubr.msk.f32.mxu1 %vm261_vm2, %v1831_v35 }
  0x70   : > { %2126 = vmatprep.mubr.msk.f32.mxu0 %vm261_vm2, %v1849_v36  ;;  %v251_v36 = vld [vmem:[#allocation2 + $0x38] sm:$0xff] }
  0x72   : > { %2113 = vmatmul.mubr.msk.f32.gmra.mxu1 %vm261_vm2, %v1885_v38 }
  0x73   : > { %2127 = vmatmul.mubr.msk.f32.gmra.mxu0 %vm261_vm2, %v1903_v39 }
  0xee   : > { %v2013_v40 = vpop.f32.mrf.mxu1 }
  0xef   : > { %v2007_v41 = vpop.f32.mrf.mxu0  ;;  %v400_v35 = vadd.f32 %v2013_v40, %v249_v27 }
  0xf0   : > { %v2661_v42 = vpop.f32.mrf.mxu1  ;;  %v396_v15 = vadd.f32 %v2007_v41, %v245_v10 }
  0xf1   : > { %v356_v43 = vpop.f32.mrf.mxu0 }
  0xf2   : > { %v2663_v44 = vpop.f32.mrf.mxu1  ;;  %v395_v19 = vadd.f32 %v356_v43, %v244_v13  ;;  %v399_v43 = vadd.f32 %v2661_v42, %v248_v29 }
  0xf3   : > { %v2010_v45 = vpop.f32.mrf.mxu0 }
  0xf4   : > { %v2665_v46 = vpop.f32.mrf.mxu1  ;;  %v398_v24 = vadd.f32 %v2010_v45, %v247_v17  ;;  %v250_v45 = vld [vmem:[#allocation2 + $0x30] sm:$0xff] }
  0xf5   : > { %v366_v47 = vpop.f32.mrf.mxu0 }
  0xf6   : > { %v2021_v48 = vpop.f32.mrf.mxu1  ;;  %v397_v30 = vadd.f32 %v366_v47, %v246_v22  ;;  %v402_v47 = vadd.f32 %v2663_v44, %v251_v36 }
  0xf7   : > { %v2035_v49 = vpop.f32.mrf.mxu0  ;;  %v546_v20 = vadd.f32 %v2021_v48, %v396_v15 }
  0xf8   : > { %v506_v50 = vpop.f32.mrf.mxu1 }
  0xf9   : > { %v656_v51 = vpop.f32.mrf.mxu0  ;;  %v545_v25 = vadd.f32 %v506_v50, %v395_v19  ;;  %v696_v31 = vadd.f32 %v2035_v49, %v546_v20 }
  0xfa   : > { %v2024_v52 = vpop.f32.mrf.mxu1 }
  0xfb   : > { %v2038_v53 = vpop.f32.mrf.mxu0  ;;  %v548_v32 = vadd.f32 %v2024_v52, %v398_v24  ;;  %v695_v37 = vadd.f32 %v656_v51, %v545_v25  ;;  %v401_v51 = vadd.f32 %v2665_v46, %v250_v45 }
  0xfc   : > { %v516_v54 = vpop.f32.mrf.mxu1 }
  0xfd   : > { %v666_v55 = vpop.f32.mrf.mxu0  ;;  %v547_v38 = vadd.f32 %v516_v54, %v397_v30  ;;  %v698_v50 = vadd.f32 %v2038_v53, %v548_v32 }
  0xfe   : > { %v2027_v56 = vpop.f32.mrf.mxu1 }
  0xff   : > { %v2667_v57 = vpop.f32.mrf.mxu0  ;;  %v550_v10 = vadd.f32 %v2027_v56, %v400_v35  ;;  %v697_v17 = vadd.f32 %v666_v55, %v547_v38 }
 0x100   : > { %v526_v58 = vpop.f32.mrf.mxu1 }
 0x101   : > { %v2669_v59 = vpop.f32.mrf.mxu0  ;;  %v549_v49 = vadd.f32 %v526_v58, %v399_v43  ;;  %v700_v42 = vadd.f32 %v2667_v57, %v550_v10 }
 0x102   : > { %v2030_v60 = vpop.f32.mrf.mxu1 }
 0x103   : > { %v2671_v61 = vpop.f32.mrf.mxu0  ;;  %v552_v54 = vadd.f32 %v2030_v60, %v402_v47 }
 0x104   : > { %v2673_v62 = vpop.f32.mrf.mxu1 }
 0x105   : > { %v2675_v63 = vpop.f32.mrf.mxu0  ;;  %v551_v44 = vadd.f32 %v2673_v62, %v401_v51  ;;  %v702_v27 = vadd.f32 %v2671_v61, %v552_v54 }
 0x106   : > { %v2049_v0 = vpop.f32.mrf.mxu1 }
 0x107   : > { %v2063_v1 = vpop.f32.mrf.mxu0  ;;  %v847_v39 = vadd.f32 %v2049_v0, %v696_v31 }
 0x108   : > { %v807_v2 = vpop.f32.mrf.mxu1 }
 0x109   : > { %v957_v3 = vpop.f32.mrf.mxu0  ;;  %v846_v13 = vadd.f32 %v807_v2, %v695_v37  ;;  %v997_v19 = vadd.f32 %v2063_v1, %v847_v39  ;;  %v699_v2 = vadd.f32 %v2669_v59, %v549_v49 }
 0x10a   : > { %v2052_v4 = vpop.f32.mrf.mxu1 }
 0x10b   : > { %v2066_v5 = vpop.f32.mrf.mxu0  ;;  %v849_v40 = vadd.f32 %v2052_v4, %v698_v50  ;;  %v996_v22 = vadd.f32 %v957_v3, %v846_v13 }
 0x10c   : > { %v817_v6 = vpop.f32.mrf.mxu1 }
 0x10d   : > { %v2677_v7 = vpop.f32.mrf.mxu0  ;;  %v848_v24 = vadd.f32 %v817_v6, %v697_v17  ;;  %v999_v25 = vadd.f32 %v2066_v5, %v849_v40 }
 0x10e   : > { %v2055_v8 = vpop.f32.mrf.mxu1 }
 0x10f   : > { %v2679_v9 = vpop.f32.mrf.mxu0  ;;  %v851_v55 = vadd.f32 %v2055_v8, %v700_v42  ;;  %v998_v29 = vadd.f32 %v2677_v7, %v848_v24 }
 0x110   : > { %v827_v11 = vpop.f32.mrf.mxu1 }
 0x111   : > { %v2681_v12 = vpop.f32.mrf.mxu0  ;;  %v850_v46 = vadd.f32 %v827_v11, %v699_v2  ;;  %v1001_v62 = vadd.f32 %v2679_v9, %v851_v55 }
 0x112   : > { %v2683_v14 = vpop.f32.mrf.mxu1 }
 0x113   : > { %v2685_v16 = vpop.f32.mrf.mxu0  ;;  %v853_v59 = vadd.f32 %v2683_v14, %v702_v27  ;;  %v1000_v61 = vadd.f32 %v2681_v12, %v850_v46 }
 0x114   : > { %v2687_v18 = vpop.f32.mrf.mxu1 }
 0x115   : > { %v2689_v21 = vpop.f32.mrf.mxu0  ;;  %v1003_v14 = vadd.f32 %v2685_v16, %v853_v59 }
 0x116   : > { %v2077_v23 = vpop.f32.mrf.mxu1 }
 0x117   : > { %v2091_v26 = vpop.f32.mrf.mxu0  ;;  %v1147_v53 = vadd.f32 %v2077_v23, %v997_v19  ;;  %v701_v23 = vadd.f32 %v2675_v63, %v551_v44 }
 0x118   : > { %v1107_v28 = vpop.f32.mrf.mxu1 }
 0x119   : > { %v1258_v33 = vpop.f32.mrf.mxu0  ;;  %v1146_v1 = vadd.f32 %v1107_v28, %v996_v22  ;;  %v1298_v57 = vadd.f32 %v2091_v26, %v1147_v53  ;;  %v852_v11 = vadd.f32 %v2687_v18, %v701_v23 }
 0x11a   : > { %v2080_v34 = vpop.f32.mrf.mxu1 }
 0x11b   : > { %v2094_v41 = vpop.f32.mrf.mxu0  ;;  %v1149_v3 = vadd.f32 %v2080_v34, %v999_v25  ;;  %v1297_v5 = vadd.f32 %v1258_v33, %v1146_v1  ;;  %v1002_v12 = vadd.f32 %v2689_v21, %v852_v11 }
 0x11c   : > { %v1117_v48 = vpop.f32.mrf.mxu1 }
 0x11d   : > { %v1268_v15 = vpop.f32.mrf.mxu0  ;;  %v1148_v8 = vadd.f32 %v1117_v48, %v998_v29  ;;  %v1300_v26 = vadd.f32 %v2094_v41, %v1149_v3 }
 0x11e   : > { %v2083_v52 = vpop.f32.mrf.mxu1 }
 0x11f   : > { %v2097_v20 = vpop.f32.mrf.mxu0  ;;  %v1151_v32 = vadd.f32 %v2083_v52, %v1001_v62  ;;  %v1299_v37 = vadd.f32 %v1268_v15, %v1148_v8 }
 0x120   : > { %v1127_v0 = vpop.f32.mrf.mxu1 }
 0x121   : > { %v1278_v56 = vpop.f32.mrf.mxu0  ;;  %v1150_v9 = vadd.f32 %v1127_v0, %v1000_v61  ;;  %v1302_v43 = vadd.f32 %v2097_v20, %v1151_v32 }
 0x122   : > { %v2086_v58 = vpop.f32.mrf.mxu1 }
 0x123   : > { %v2100_v4 = vpop.f32.mrf.mxu0  ;;  %v1153_v48 = vadd.f32 %v2086_v58, %v1003_v14  ;;  %v1301_v16 = vadd.f32 %v1278_v56, %v1150_v9 }
 0x124   : > { %v1137_v60 = vpop.f32.mrf.mxu1 }
 0x125   : > { %v1288_v6 = vpop.f32.mrf.mxu0  ;;  %v1152_v13 = vadd.f32 %v1137_v60, %v1002_v12  ;;  %v1304_v17 = vadd.f32 %v2100_v4, %v1153_v48 }
 0x126   : > { %v2105_v30 = vpop.f32.mrf.mxu1 }
 0x127   : > { %v1448_v28 = vadd.f32 %v2105_v30, %v1298_v57  ;;  %v2119_v31 = vpop.f32.mrf.mxu0  ;;  %v1303_v51 = vadd.f32 %v1288_v6, %v1152_v13 }
 0x128   : > { %v1408_v7 = vpop.f32.mrf.mxu1 }
 0x129   : > { %v1598_v34 = vadd.f32 %v2119_v31, %v1448_v28  ;;  %v1447_v35 = vadd.f32 %v1408_v7, %v1297_v5  ;;  %v1558_v63 = vpop.f32.mrf.mxu0 }
 0x12a   : > { %v2108_v36 = vpop.f32.mrf.mxu1 }
 0x12b   : > { %1607 = vst.msk [vmem:[#allocation2 + $0x8] sm:$0xff] %vm1605_vm3, %v1598_v34  ;;  %v1597_v33 = vadd.f32 %v1558_v63, %v1447_v35  ;;  %v1450_v38 = vadd.f32 %v2108_v36, %v1300_v26  ;;  %v2122_v39 = vpop.f32.mrf.mxu0 }
 0x12c   : > { %v1418_v18 = vpop.f32.mrf.mxu1 }
 0x12d   : > { %1606 = vst.msk [vmem:[#allocation2] sm:$0xff] %vm1605_vm3, %v1597_v33  ;;  %v1600_v41 = vadd.f32 %v2122_v39, %v1450_v38  ;;  %v1449_v45 = vadd.f32 %v1418_v18, %v1299_v37  ;;  %v1568_v50 = vpop.f32.mrf.mxu0 }
 0x12e   : > { %v2111_v10 = vpop.f32.mrf.mxu1 }
 0x12f   : > { %1609 = vst.msk [vmem:[#allocation2 + $0x18] sm:$0xff] %vm1605_vm3, %v1600_v41  ;;  %v1599_v15 = vadd.f32 %v1568_v50, %v1449_v45  ;;  %v1452_v47 = vadd.f32 %v2111_v10, %v1302_v43  ;;  %v2125_v49 = vpop.f32.mrf.mxu0 }
 0x130   : > { %v1428_v52 = vpop.f32.mrf.mxu1 }
 0x131   : > { %1608 = vst.msk [vmem:[#allocation2 + $0x10] sm:$0xff] %vm1605_vm3, %v1599_v15  ;;  %v1602_v21 = vadd.f32 %v2125_v49, %v1452_v47  ;;  %v1451_v19 = vadd.f32 %v1428_v52, %v1301_v16  ;;  %v1578_v40 = vpop.f32.mrf.mxu0 }
 0x132   : > { %v2114_v20 = vpop.f32.mrf.mxu1 }
 0x133   : > { %1611 = vst.msk [vmem:[#allocation2 + $0x28] sm:$0xff] %vm1605_vm3, %v1602_v21  ;;  %v1601_v54 = vadd.f32 %v1578_v40, %v1451_v19  ;;  %v1454_v0 = vadd.f32 %v2114_v20, %v1304_v17  ;;  %v2128_v42 = vpop.f32.mrf.mxu0 }
 0x134   : > { %v1438_v22 = vpop.f32.mrf.mxu1 }
 0x135   : > { %1610 = vst.msk [vmem:[#allocation2 + $0x20] sm:$0xff] %vm1605_vm3, %v1601_v54  ;;  %v1604_v24 = vadd.f32 %v2128_v42, %v1454_v0  ;;  %v1453_v53 = vadd.f32 %v1438_v22, %v1303_v51  ;;  %v1588_v56 = vpop.f32.mrf.mxu0  ;;  %1617 = sbr.rel (%p1914_p3) target bundleno = 324 (0x144), region = 40 }
 0x137   : > { %1613 = vst.msk [vmem:[#allocation2 + $0x38] sm:$0xff] %vm1605_vm3, %v1604_v24  ;;  %v1603_v2 = vadd.f32 %v1588_v56, %v1453_v53 }
 0x139   : > { %1612 = vst.msk [vmem:[#allocation2 + $0x30] sm:$0xff] %vm1605_vm3, %v1603_v2 }
 0x13a   : > { %v1618_v44 = vld [vmem:[#allocation2] sm:$0xff]  ;;  %v1619_v25 = vld [vmem:[#allocation2 + $0x8] sm:$0xff]  ;;  %v1620_v4 = vld [vmem:[#allocation2 + $0x10] sm:$0xff] }
 0x13b   : > { %v1915_v58 = vld [vmem:[%s2805_s2] ss:$0 sm:$0xff]  ;;  %v1621_v27 = vld [vmem:[#allocation2 + $0x18] sm:$0xff]  ;;  %v1623_v3 = vld [vmem:[#allocation2 + $0x28] sm:$0xff] }
 0x13c   : > { %v1633_v55 = vadd.f32 %v1915_v58, %v1618_v44  ;;  %v1634_v1 = vadd.f32 %v1915_v58, %v1619_v25  ;;  %v1622_v46 = vld [vmem:[#allocation2 + $0x20] sm:$0xff]  ;;  %v1635_v60 = vadd.f32 %v1915_v58, %v1620_v4  ;;  %v1636_v29 = vadd.f32 %v1915_v58, %v1621_v27 }
 0x13d   : > { %v1637_v57 = vadd.f32 %v1915_v58, %v1622_v46  ;;  %v1638_v59 = vadd.f32 %v1915_v58, %v1623_v3 }
 0x13e   : > { %v1625_v23 = vld [vmem:[#allocation2 + $0x38] sm:$0xff]  ;;  %1641 = vst.msk [vmem:[%s2462_s19] sm:$0xff] %vm1605_vm3, %v1633_v55  ;;  %1642 = vst.msk [vmem:[%s2462_s19 + $0x8] sm:$0xff] %vm1605_vm3, %v1634_v1 }
 0x13f   : > { %v1640_v62 = vadd.f32 %v1915_v58, %v1625_v23  ;;  %1643 = vst.msk [vmem:[%s2462_s19 + $0x10] sm:$0xff] %vm1605_vm3, %v1635_v60  ;;  %1644 = vst.msk [vmem:[%s2462_s19 + $0x18] sm:$0xff] %vm1605_vm3, %v1636_v29 }
 0x140   : > { %v1624_v6 = vld [vmem:[#allocation2 + $0x30] sm:$0xff]  ;;  %1645 = vst.msk [vmem:[%s2462_s19 + $0x20] sm:$0xff] %vm1605_vm3, %v1637_v57  ;;  %1646 = vst.msk [vmem:[%s2462_s19 + $0x28] sm:$0xff] %vm1605_vm3, %v1638_v59 }
 0x141   : > { %v1639_v30 = vadd.f32 %v1915_v58, %v1624_v6  ;;  %1648 = vst.msk [vmem:[%s2462_s19 + $0x38] sm:$0xff] %vm1605_vm3, %v1640_v62 }
 0x143   : > { %1647 = vst.msk [vmem:[%s2462_s19 + $0x30] sm:$0xff] %vm1605_vm3, %v1639_v30 }
 0x144 PF: > { %s1917_s15 = sshll.u32 %s2312_s16, 3  ;;  %s1918_s25 = sshll.u32 %s2316_s17, 6 }
 0x145   : > { %s1665_s26 = sshll.u32 %s2462_s19, 4  ;;  %s1662_s7 = sadd.s32 %s1918_s25, %s1917_s15  ;;  %s2737_s26 = int_to_ptr.vmem [resolvable:$true] %s1665_s26 }
 0x146   : > { %s1919_s8 = sshll.u32 %s1662_s7, 7  ;;  %s2819_s22 = sand.u32 1, %s2300_s13  }
 0x147   : > { %s2742_s11 = scalar_lea.hbm %s2806_s3, %s1919_s8  ;;  %s2746_s23 = scalar_lea.sflag [#allocation4], %s2819_s22 }
 0x148   : > { %s2224_s29 = scalar_lea.vmem %s2737_s26, 1024  ;;  %s2335_s16 = smov [#allocation3]  }
 0x149   : > { %p2225_p4 = scmp.ne.s32.totalorder %s2737_s26, %s2224_s29  ;;  %s2228_s17 = sshll.u32 %s2335_s16, 4  ;;  %s2229_s17 = int_to_ptr.vmem [resolvable:$false] %s2228_s17 }
 0x14a   : > { %s2230_s19 = scalar_lea.vmem %s2229_s17, 2048  ;;  %p2231_p9 = scmp.lt.s32.totalorder %s2737_s26, %s2229_s17 }
 0x14b   : > { %p2226_p5 = pnand %p2225_p4, %p2420_p6  ;;  %p2232_p10 = scmp.lt.s32.totalorder %s2230_s19, %s2224_s29 }
 0x14d   : > { %p2227_p8 = pneg %p2226_p5  ;;  %p2233_p11 = por %p2232_p10, %p2231_p9 }
 0x14f   : > { %p2234_p12 = pnand %p2233_p11, %p2227_p8 }
 0x151   : > { %2237 = shalt.err (!%p2234_p12)
}
 0x152   : > { %s2238_s30 = scalar_lea.hbm %s2742_s11, 1024  ;;  %s2242_s20 = scalar_lea.hbm %s2806_s3, 16384 }
 0x153   : > { %p2239_p13 = scmp.ne.s32.totalorder %s2742_s11, %s2238_s30  ;;  %p2243_p2 = scmp.lt.s32.totalorder %s2742_s11, %s2806_s3 }
 0x154   : > { %p2244_p3 = scmp.lt.s32.totalorder %s2242_s20, %s2238_s30 }
 0x155   : > { %p2240_p0 = pnand %p2239_p13, %p2420_p6 }
 0x156   : > { %p2245_p4 = por %p2244_p3, %p2243_p2 }
 0x157   : > { %p2241_p1 = pneg %p2240_p0 }
 0x159   : > { %p2246_p5 = pnand %p2245_p4, %p2241_p1 }
 0x15b   : > { %2249 = shalt.err (!%p2246_p5)
}
 0x15c   : > { %s2336_s25 = smov 128   ;;  %s2337_s7 = smov 8  }
 0x15d   : > { %2134 = dma.vmem_to_hbm [thread:$0]  (%p2420_p6), %s2737_s26, 1024, %s2742_s11, %s2746_s23, %s2336_s25, %s2336_s25, %s2337_s7  }
 0x15e PF: > { %p2140_p8 = scmp.ge.s32.totalorder %s2332_s21, 2  ;;  %s1680_s8 = sand.u32 1, %s2296_s12  }
 0x15f   : > { %s1681_s9 = scalar_lea.sflag [#allocation4], %s1680_s8 }
 0x160   : > { %p2137_p9 = pnand %p2140_p8, %p2427_p7 }
 0x162   : > { %p2138_p10 = pneg %p2137_p9 }
 0x164   : > { %2291 = dma.done.wait (%p2138_p10), %s1681_s9, 1024  }
 0x165   : > { %2293 = vsyncadd (%p2138_p10), %s1681_s9, 4294966272  ;;  %s16_s21 = sadd.s32 1, %s2332_s21   ;;  %s2820_s16 = sld [smem:[#allocation6_spill]] }
 0x166   : > { %p13_p11 = scmp.ge.s32.totalorder %s16_s21, 50   ;;  %s2821_s17 = sld [smem:[#allocation7_spill]] }
 0x167   : > { %s2822_s27 = sld [smem:[#allocation8_spill]]  ;;  %s2825_s12 = smov %s2300_s13 }
 0x168   : > { %s2823_s19 = sld [smem:[#allocation9_spill]]  ;;  %s2826_s13 = smov %s2304_s14 }
 0x169   : > { %s2824_s20 = sld [smem:[#allocation10_spill]]  ;;  %s2827_s14 = smov %s2441_s6 }
 0x16a   : > { %s2828_s15 = smov %s2320_s18  ;;  %15 = sbr.rel (!%p13_p11) target bundleno = 6 (0x6), region = 88 }
 0x16d   : > { %s2829_s18 = smov %s2822_s27 }
 0x16f   :  { %1686 = vsyncpa [#allocation4], 1 }
 0x170   :  { %1688 = vsyncpa [#allocation4 + $0x1], 1 }

</bundles_post_ra>
